<compile_context>
chip_gen: v6e
topology: v6e:2x2x1
jax: 0.10.0
libtpu: 0.0.40
codegen_flags: <defaults>
</compile_context>

<pallas_src>
import functools

import jax
import jax.numpy as jnp
from jax import lax
from jax.experimental import pallas as pl
from jax.experimental.pallas import tpu as pltpu

_LANE = 128                              # vreg lane width
_ACC_ROWS = 8                            # one f32 vreg deep accumulators
_TARGET_TILE_BYTES = 2 * 1024 * 1024     # ~2 MiB per input tile per grid step


def _round_up(x, m):
    return ((x + m - 1) // m) * m


def _loss_kernel(o_ref, t_ref, out_ref, sq_acc, abs_acc, *,
                 rows, block_rows, num_blocks, need_mask, need_skip,
                 l2_w, l1_w, inv_n):
    c = pl.program_id(0)                  # core (parallel) axis
    i = pl.program_id(1)                  # block (reduction) axis
    g = c * pl.num_programs(1) + i        # global block index

    @pl.when(i == 0)
    def _init():
        sq_acc[...] = jnp.zeros_like(sq_acc)
        abs_acc[...] = jnp.zeros_like(abs_acc)

    def _accum(d):
        # (block_rows, 128) -> (block_rows//8, 8, 128): native f32 vreg tiling,
        # so the reshape is free and the axis-0 sum is pure VALU adds (no XLU).
        d3 = d.reshape(block_rows // _ACC_ROWS, _ACC_ROWS, _LANE)
        sq_acc[...] += jnp.sum(d3 * d3, axis=0)
        abs_acc[...] += jnp.sum(jnp.abs(d3), axis=0)

    d = o_ref[...].astype(jnp.float32) - t_ref[...].astype(jnp.float32)

    if need_mask:
        # Only the last valid block has Pallas-padded garbage rows; keep the
        # iota/compare/select off the steady-state path.
        @pl.when(g == num_blocks - 1)
        def _ragged_tail():
            row_ids = lax.broadcasted_iota(jnp.int32, d.shape, 0) + g * block_rows
            _accum(jnp.where(row_ids < rows, d, jnp.float32(0.0)))

        @pl.when(g < num_blocks - 1)
        def _steady():
            _accum(d)
        # g >= num_blocks (odd block count, 2nd core's padded step): no accumulate.
    elif need_skip:
        @pl.when(g < num_blocks)
        def _steady():
            _accum(d)
    else:
        _accum(d)

    @pl.when(i == pl.num_programs(1) - 1)
    def _finalize():
        # Per-core weighted partial; the wrapper sums the (num_cores,) partials.
        out_ref[0, 0] = (jnp.float32(l2_w) * jnp.sum(sq_acc[...])
                         + jnp.float32(l1_w) * jnp.sum(abs_acc[...])) * jnp.float32(inv_n)


def pallas_loss(output, target, l2_weight=1.0, l1_weight=1.0):
    assert output.shape == target.shape, "output/target shape mismatch"
    n_elems = int(output.size)
    assert n_elems > 0, "empty input"

    o = output.reshape(-1)
    t = target.reshape(-1)

    # Pad only the ragged 128-lane tail; zeros contribute 0 to both sums and
    # the mean divides by the true n_elems.
    rem = n_elems % _LANE
    if rem != 0:
        pad = _LANE - rem
        o = jnp.pad(o, (0, pad))
        t = jnp.pad(t, (0, pad))
    rows = o.shape[0] // _LANE
    o2 = o.reshape(rows, _LANE)
    t2 = t.reshape(rows, _LANE)

    # Second-minor multiple respecting dtype sublane packing (8 f32 / 16 bf16 / 32 i8).
    def _pack(x):
        return 8 * max(1, 4 // jnp.dtype(x.dtype).itemsize)
    sub = max(_pack(o2), _pack(t2))

    # Constant ~2 MiB per input tile per step regardless of dtype.
    max_item = max(jnp.dtype(o2.dtype).itemsize, jnp.dtype(t2.dtype).itemsize)
    target_rows = _round_up(max(_TARGET_TILE_BYTES // (_LANE * max_item), sub), sub)
    block_rows = min(target_rows, _round_up(rows, sub))
    num_blocks = pl.cdiv(rows, block_rows)
    need_mask = (rows % block_rows) != 0

    # Split blocks across 2 TensorCores (v7x). On 1-TC chips the "parallel"
    # axis just runs serially, with negligible overhead.
    num_cores = 2 if num_blocks >= 2 else 1
    bpc = pl.cdiv(num_blocks, num_cores)              # blocks per core
    need_skip = (num_cores * bpc) != num_blocks       # odd block count

    # TODO(synk): for extremely large inputs (>~1e9 elems) consider a two-level
    # accumulation for tighter f32 error bounds; single-vreg partials are fine
    # at practical training-loss sizes.
    kernel = functools.partial(
        _loss_kernel, rows=rows, block_rows=block_rows, num_blocks=num_blocks,
        need_mask=need_mask, need_skip=need_skip,
        l2_w=float(l2_weight), l1_w=float(l1_weight), inv_n=1.0 / n_elems)

    def in_map(c, i):
        # Clamp the (at most one) past-the-end step to a valid block; its
        # contribution is skipped inside the kernel.
        return (jnp.minimum(c * bpc + i, num_blocks - 1), 0)

    partials = pl.pallas_call(
        kernel,
        out_shape=jax.ShapeDtypeStruct((num_cores, 1), jnp.float32),
        grid_spec=pltpu.PrefetchScalarGridSpec(
            num_scalar_prefetch=0,
            grid=(num_cores, bpc),
            in_specs=[
                pl.BlockSpec((block_rows, _LANE), in_map),
                pl.BlockSpec((block_rows, _LANE), in_map),
            ],
            out_specs=pl.BlockSpec((1, 1), lambda c, i: (c, 0),
                                   memory_space=pltpu.SMEM),
            scratch_shapes=[
                pltpu.VMEM((_ACC_ROWS, _LANE), jnp.float32),
                pltpu.VMEM((_ACC_ROWS, _LANE), jnp.float32),
            ],
        ),
        compiler_params=pltpu.CompilerParams(
            dimension_semantics=("parallel", "arbitrary"),
        ),
    )(o2, t2)

    return jnp.sum(partials)


def _reference_loss(output, target, l2_weight=1.0, l1_weight=1.0):
    d = output.astype(jnp.float32) - target.astype(jnp.float32)
    return l2_weight * jnp.mean(d * d) + l1_weight * jnp.mean(jnp.abs(d))


if __name__ == "__main__":
    key = jax.random.PRNGKey(0)
    k1, k2, k3, k4, k5, k6 = jax.random.split(key, 6)

    # Primary check: typical NCHW regression output, f32 (single block, 1 core).
    shape = (2, 4, 16, 16)
    output = jax.random.normal(k1, shape, dtype=jnp.float32)
    target = jax.random.normal(k2, shape, dtype=jnp.float32)
    loss = jax.block_until_ready(pallas_loss(output, target, 1.0, 1.0))
    ref = _reference_loss(output, target, 1.0, 1.0)
    assert jnp.allclose(loss, ref, rtol=1e-5, atol=1e-6), (loss, ref)

    # Ragged check: size not a multiple of 128, non-unit weights (mask path).
    shape2 = (2, 3, 7, 5)
    o2 = jax.random.normal(k3, shape2, dtype=jnp.float32)
    t2 = jax.random.normal(k4, shape2, dtype=jnp.float32)
    loss2 = jax.block_until_ready(pallas_loss(o2, t2, 0.7, 0.3))
    ref2 = _reference_loss(o2, t2, 0.7, 0.3)
    assert jnp.allclose(loss2, ref2, rtol=1e-5, atol=1e-6), (loss2, ref2)

    # bf16 check: inputs stream in native dtype, cast to f32 inside the kernel.
    o3 = output.astype(jnp.bfloat16)
    t3 = target.astype(jnp.bfloat16)
    loss3 = jax.block_until_ready(pallas_loss(o3, t3, 1.0, 1.0))
    ref3 = _reference_loss(o3, t3, 1.0, 1.0)
    assert jnp.allclose(loss3, ref3, rtol=1e-5, atol=1e-6), (loss3, ref3)

    # Multi-block check: exercises 2-core split, odd block count (skip step)
    # and the gated ragged-tail mask on the last valid block.
    shape4 = (8292, 128)
    o4 = jax.random.normal(k5, shape4, dtype=jnp.float32)
    t4 = jax.random.normal(k6, shape4, dtype=jnp.float32)
    loss4 = jax.block_until_ready(pallas_loss(o4, t4, 0.5, 2.0))
    ref4 = _reference_loss(o4, t4, 0.5, 2.0)
    assert jnp.allclose(loss4, ref4, rtol=1e-4, atol=1e-6), (loss4, ref4)

    print("KERNEL_OK")
</pallas_src>

<mosaic_0001>
module attributes {stable_mosaic.version = 11 : i64} {
  func.func @_loss_kernel(%arg0: i32, %arg1: i32, %arg2: memref<16x128xf32, #tpu.memory_space<vmem>>, %arg3: memref<16x128xf32, #tpu.memory_space<vmem>>, %arg4: memref<1x1xf32, #tpu.memory_space<smem>>, %arg5: memref<8x128xf32, #tpu.memory_space<vmem>>, %arg6: memref<8x128xf32, #tpu.memory_space<vmem>>) attributes {dimension_semantics = [#tpu.dimension_semantics<parallel>, #tpu.dimension_semantics<arbitrary>], iteration_bounds = array<i64: 1, 1>, scalar_prefetch = 0 : i64, scratch_operands = 2 : i64, tpu.core_type = #tpu.core_type<tc>, window_params = [{transform_indices = @transform_0, window_bounds = array<i64: 16, 128>}, {transform_indices = @transform_1, window_bounds = array<i64: 16, 128>}, {transform_indices = @transform_2, window_bounds = array<i64: 1, 1>}]} {
    %c0_i32 = arith.constant 0 : i32
    %0 = arith.cmpi eq, %arg1, %c0_i32 : i32
    %1 = arith.extui %0 : i1 to i32
    %c0_i32_0 = arith.constant 0 : i32
    %2 = arith.cmpi ne, %1, %c0_i32_0 : i32
    scf.if %2 {
      %cst_15 = arith.constant 0.000000e+00 : f32
      %20 = vector.broadcast %cst_15 : f32 to vector<8x128xf32>
      %c0_16 = arith.constant 0 : index
      %c0_17 = arith.constant 0 : index
      %21 = vector.load %arg5[%c0_16, %c0_17] : memref<8x128xf32, #tpu.memory_space<vmem>>, vector<8x128xf32>
      tpu.vector_store %arg5[%c0_16, %c0_17], %20 {strides = array<i32>} : memref<8x128xf32, #tpu.memory_space<vmem>>, vector<8x128xf32>,
      %cst_18 = arith.constant 0.000000e+00 : f32
      %22 = vector.broadcast %cst_18 : f32 to vector<8x128xf32>
      %c0_19 = arith.constant 0 : index
      %c0_20 = arith.constant 0 : index
      %23 = vector.load %arg6[%c0_19, %c0_20] : memref<8x128xf32, #tpu.memory_space<vmem>>, vector<8x128xf32>
      tpu.vector_store %arg6[%c0_19, %c0_20], %22 {strides = array<i32>} : memref<8x128xf32, #tpu.memory_space<vmem>>, vector<8x128xf32>,
    } else {
    }
    %c0 = arith.constant 0 : index
    %c0_1 = arith.constant 0 : index
    %3 = vector.load %arg2[%c0, %c0_1] : memref<16x128xf32, #tpu.memory_space<vmem>>, vector<16x128xf32>
    %c0_2 = arith.constant 0 : index
    %c0_3 = arith.constant 0 : index
    %4 = vector.load %arg3[%c0_2, %c0_3] : memref<16x128xf32, #tpu.memory_space<vmem>>, vector<16x128xf32>
    %5 = arith.subf %3, %4 : vector<16x128xf32>
    %6 = vector.shape_cast %5 : vector<16x128xf32> to vector<2x8x128xf32>
    %c0_4 = arith.constant 0 : index
    %c0_5 = arith.constant 0 : index
    %7 = vector.load %arg5[%c0_4, %c0_5] : memref<8x128xf32, #tpu.memory_space<vmem>>, vector<8x128xf32>
    %8 = arith.mulf %6, %6 : vector<2x8x128xf32>
    %cst = arith.constant dense<0.000000e+00> : vector<8x128xf32>
    %9 = vector.multi_reduction <add>, %8, %cst [0] : vector<2x8x128xf32> to vector<8x128xf32>
    %10 = arith.addf %7, %9 : vector<8x128xf32>
    %c0_6 = arith.constant 0 : index
    %c0_7 = arith.constant 0 : index
    %11 = vector.load %arg5[%c0_6, %c0_7] : memref<8x128xf32, #tpu.memory_space<vmem>>, vector<8x128xf32>
    tpu.vector_store %arg5[%c0_6, %c0_7], %10 {strides = array<i32>} : memref<8x128xf32, #tpu.memory_space<vmem>>, vector<8x128xf32>,
    %c0_8 = arith.constant 0 : index
    %c0_9 = arith.constant 0 : index
    %12 = vector.load %arg6[%c0_8, %c0_9] : memref<8x128xf32, #tpu.memory_space<vmem>>, vector<8x128xf32>
    %13 = math.absf %6 : vector<2x8x128xf32>
    %cst_10 = arith.constant dense<0.000000e+00> : vector<8x128xf32>
    %14 = vector.multi_reduction <add>, %13, %cst_10 [0] : vector<2x8x128xf32> to vector<8x128xf32>
    %15 = arith.addf %12, %14 : vector<8x128xf32>
    %c0_11 = arith.constant 0 : index
    %c0_12 = arith.constant 0 : index
    %16 = vector.load %arg6[%c0_11, %c0_12] : memref<8x128xf32, #tpu.memory_space<vmem>>, vector<8x128xf32>
    tpu.vector_store %arg6[%c0_11, %c0_12], %15 {strides = array<i32>} : memref<8x128xf32, #tpu.memory_space<vmem>>, vector<8x128xf32>,
    %c0_i32_13 = arith.constant 0 : i32
    %17 = arith.cmpi eq, %arg1, %c0_i32_13 : i32
    %18 = arith.extui %17 : i1 to i32
    %c0_i32_14 = arith.constant 0 : i32
    %19 = arith.cmpi ne, %18, %c0_i32_14 : i32
    scf.if %19 {
      %c0_15 = arith.constant 0 : index
      %c0_16 = arith.constant 0 : index
      %20 = vector.load %arg5[%c0_15, %c0_16] : memref<8x128xf32, #tpu.memory_space<vmem>>, vector<8x128xf32>
      %21 = vector.shape_cast %20 : vector<8x128xf32> to vector<1x8x128xf32>
      %cst_17 = arith.constant dense<0.000000e+00> : vector<1xf32>
      %22 = vector.multi_reduction <add>, %21, %cst_17 [1, 2] : vector<1x8x128xf32> to vector<1xf32>
      %23 = vector.shape_cast %22 : vector<1xf32> to vector<1x1x1xf32>
      %24 = vector.extract %23[0, 0, 0] : f32 from vector<1x1x1xf32>
      %cst_18 = arith.constant 1.000000e+00 : f32
      %25 = arith.mulf %cst_18, %24 : f32
      %c0_19 = arith.constant 0 : index
      %c0_20 = arith.constant 0 : index
      %26 = vector.load %arg6[%c0_19, %c0_20] : memref<8x128xf32, #tpu.memory_space<vmem>>, vector<8x128xf32>
      %27 = vector.shape_cast %26 : vector<8x128xf32> to vector<1x8x128xf32>
      %cst_21 = arith.constant dense<0.000000e+00> : vector<1xf32>
      %28 = vector.multi_reduction <add>, %27, %cst_21 [1, 2] : vector<1x8x128xf32> to vector<1xf32>
      %29 = vector.shape_cast %28 : vector<1xf32> to vector<1x1x1xf32>
      %30 = vector.extract %29[0, 0, 0] : f32 from vector<1x1x1xf32>
      %cst_22 = arith.constant 1.000000e+00 : f32
      %31 = arith.mulf %cst_22, %30 : f32
      %32 = arith.addf %25, %31 : f32
      %cst_23 = arith.constant 4.8828125E-4 : f32
      %33 = arith.mulf %32, %cst_23 : f32
      %c0_24 = arith.constant 0 : index
      %c0_25 = arith.constant 0 : index
      %34 = memref.load %arg4[%c0_24, %c0_25] : memref<1x1xf32, #tpu.memory_space<smem>>
      memref.store %33, %arg4[%c0_24, %c0_25] : memref<1x1xf32, #tpu.memory_space<smem>>
    } else {
    }
    return
  }
  func.func @transform_0(%arg0: i32, %arg1: i32) -> (i32, i32) {
    %c1_i32 = arith.constant 1 : i32
    %0 = arith.muli %arg0, %c1_i32 : i32
    %1 = arith.addi %0, %arg1 : i32
    %c0_i32 = arith.constant 0 : i32
    %2 = arith.minsi %1, %c0_i32 : i32
    %c0_i32_0 = arith.constant 0 : i32
    %c0_i32_1 = arith.constant 0 : i32
    return %2, %c0_i32_0 : i32, i32
  }
  func.func @transform_1(%arg0: i32, %arg1: i32) -> (i32, i32) {
    %c1_i32 = arith.constant 1 : i32
    %0 = arith.muli %arg0, %c1_i32 : i32
    %1 = arith.addi %0, %arg1 : i32
    %c0_i32 = arith.constant 0 : i32
    %2 = arith.minsi %1, %c0_i32 : i32
    %c0_i32_0 = arith.constant 0 : i32
    %c0_i32_1 = arith.constant 0 : i32
    return %2, %c0_i32_0 : i32, i32
  }
  func.func @transform_2(%arg0: i32, %arg1: i32) -> (i32, i32) {
    %c0_i32 = arith.constant 0 : i32
    %c0_i32_0 = arith.constant 0 : i32
    return %arg0, %c0_i32 : i32, i32
  }
}

</mosaic_0001>

<bundles_post_ra>
// kernel: tpu_custom_call.1
= control target key start
LH: loop header
LB: loop body
LE: loop exit
PB: predicated region body
PF: predicated region fallthrough
CT: control target
= control target key end

     0   :  { %7 = vsyncpa [#allocation5], 0  ;;  %s222_s0 = inlined_call_operand.hbm [shape: f32[16,128], index: 0, kind: input, shape index: {}]   ;;  %s223_s1 = inlined_call_operand.hbm [shape: f32[16,128], index: 1, kind: input, shape index: {}]   ;;  %s224_s2 = inlined_call_operand.hbm [shape: f32[1,1], index: 2, kind: output, shape index: {}]  }
   0x1   :  { %8 = vsyncpa [#allocation8], 0 }
   0x2   :  { %9 = vsyncpa [#allocation6], 0  ;;  %s193_s9 = smov [#allocation4]  }
   0x3   :  { %s21_s10 = sshll.u32 %s193_s9, 4  ;;  %s22_s10 = int_to_ptr.vmem [resolvable:$true] %s21_s10 }
   0x4   :  { %s147_s11 = scalar_lea.vmem %s22_s10, 256  ;;  %p152_p1 = scmp.lt.s32.totalorder %s22_s10, %s22_s10 }
   0x5   :  { %p148_p0 = scmp.ne.s32.totalorder %s22_s10, %s147_s11  ;;  %p153_p2 = scmp.lt.s32.totalorder %s147_s11, %s147_s11 }
   0x7   :  { %p154_p3 = por %p153_p2, %p152_p1 }
   0x9   :  { %p155_p4 = pnand %p154_p3, %p148_p0 }
   0xb   :  { %158 = shalt.err (!%p155_p4)
}
   0xc   :  { %s194_s12 = smov 128   ;;  %s195_s13 = smov 8  }
   0xd   :  { %27 = dma.hbm_to_vmem [thread:$0]  %s222_s0, 256, %s22_s10, [#allocation5], %s194_s12, %s194_s12, %s195_s13  }
   0xe   :  { %s196_s16 = smov [#allocation7]  }
   0xf   :  { %s39_s17 = sshll.u32 %s196_s16, 4  ;;  %s40_s17 = int_to_ptr.vmem [resolvable:$true] %s39_s17 }
  0x10   :  { %s167_s18 = scalar_lea.vmem %s40_s17, 256  ;;  %p172_p6 = scmp.lt.s32.totalorder %s40_s17, %s40_s17 }
  0x11   :  { %p168_p5 = scmp.ne.s32.totalorder %s40_s17, %s167_s18  ;;  %p173_p7 = scmp.lt.s32.totalorder %s167_s18, %s167_s18 }
  0x13   :  { %p174_p8 = por %p173_p7, %p172_p6 }
  0x15   :  { %p175_p9 = pnand %p174_p8, %p168_p5 }
  0x17   :  { %178 = shalt.err (!%p175_p9)
}
  0x18   :  { %45 = dma.hbm_to_vmem [thread:$0]  %s223_s1, 256, %s40_s17, [#allocation8], %s194_s12, %s194_s12, %s195_s13  }
  0x19   :  { %187 = dma.done.wait [#allocation5], 256  }
  0x1a   :  { %188 = vsyncadd [#allocation5], 4294967040 }
  0x1b   :  { %189 = dma.done.wait [#allocation8], 256  }
  0x1c   :  { %190 = vsyncadd [#allocation8], 4294967040  ;;  %v66_v0 = vld [vmem:[#allocation4] sm:$0xff]  ;;  %v67_v1 = vld [vmem:[#allocation4 + $0x8] sm:$0xff]  ;;  %s197_s23 = smov [#allocation9]  }
  0x1d   :  { %v68_v2 = vld [vmem:[#allocation7] sm:$0xff]  ;;  %v69_v3 = vld [vmem:[#allocation7 + $0x8] sm:$0xff] }
  0x1e   :  { %v70_v4 = vsub.f32 %v66_v0, %v68_v2  ;;  %v71_v5 = vsub.f32 %v67_v1, %v69_v3 }
  0x20   :  { %v73_v6 = vmul.f32 %v70_v4, %v70_v4  ;;  %v74_v7 = vmul.f32 %v71_v5, %v71_v5  ;;  %v79_v8 = vand.u32 2147483647, %v70_v4  ;;  %v80_v9 = vand.u32 2147483647, %v71_v5 }
  0x22   :  { %v75_v10 = vadd.f32 %v74_v7, %v73_v6  ;;  %v81_v11 = vadd.f32 %v80_v9, %v79_v8 }
  0x24   :  { %88 = vadd.xlane.f32.xlu0 %v75_v10 }
  0x28   :  { %98 = vadd.xlane.f32.xlu0 %v81_v11 }
  0xad   :  { %v89_v12 = vpop.xlane.xlu0 %88 }
  0xae   :  { %v90_v13 = vrot.slane %v89_v12, 4 }
  0xb0   :  { %v91_v14 = vadd.f32 %v90_v13, %v89_v12 }
  0xb1   :  { %v99_v15 = vpop.xlane.xlu0 %98 }
  0xb2   :  { %v92_v16 = vrot.slane %v91_v14, 2  ;;  %v100_v17 = vrot.slane %v99_v15, 4 }
  0xb4   :  { %v101_v18 = vadd.f32 %v100_v17, %v99_v15  ;;  %v93_v19 = vadd.f32 %v92_v16, %v91_v14 }
  0xb6   :  { %v102_v20 = vrot.slane %v101_v18, 2  ;;  %v94_v21 = vrot.slane %v93_v19, 1 }
  0xb8   :  { %v103_v22 = vadd.f32 %v102_v20, %v101_v18  ;;  %v95_v23 = vadd.f32 %v94_v21, %v93_v19 }
  0xba   :  { %130 = vpush %v95_v23  ;;  %v104_v24 = vrot.slane %v103_v22, 1 }
  0xbc   :  { %v105_v25 = vadd.f32 %v104_v24, %v103_v22 }
  0xbe   :  { %132 = vpush %v105_v25 }
  0xeb   :  { %s131_s0 = spop %130 }
  0xef   :  { %s133_s1 = spop %132 }
  0xf0   :  { %s107_s21 = sadd.f32 %s133_s1, %s131_s0 }
  0xf2   :  { %s108_s22 = smul.f32 0.00048828125, %s107_s21 }
  0xf4   :  { %110 = sst [smem:[#allocation9]] %s108_s22 }
  0xf5   :  { %118 = dma.smem_to_hbm %s197_s23, 16, %s224_s2, [#allocation6]  }
  0xf6   :  { %191 = dma.done.wait [#allocation6], 16  }
  0xf7   :  { %192 = vsyncadd [#allocation6], 4294967280 }
  0xf8   :  { %122 = sfence }
  0xf9   :  { %123 = vsyncpa [#allocation5], 1 }
  0xfa   :  { %124 = vsyncpa [#allocation8], 1 }
  0xfb   :  { %125 = vsyncpa [#allocation6], 1 }

</bundles_post_ra>
